<compile_context>
chip_gen: v5e
topology: v5e:2x2
jax: 0.10.0
libtpu: 0.0.40
codegen_flags: <defaults>
</compile_context>

<pallas_src>
import functools

import jax
import jax.numpy as jnp
from jax.experimental import pallas as pl
from jax.experimental.pallas import tpu as pltpu

_PAD_SENTINEL = 1e30  # membership saturates to exactly 0 at padded cells


def _compute_dtype():
    """bf16 membership math on v6e/v7x (bf16 VPU/EUP); f32 elsewhere."""
    try:
        kind = jax.devices()[0].device_kind.lower()
    except Exception:
        return jnp.float32
    if any(tag in kind for tag in ("v6", "v7", "7x")):
        return jnp.bfloat16
    return jnp.float32


def _vmem_capacity_bytes():
    try:
        return int(pltpu.get_tpu_info().vmem_capacity_bytes)
    except Exception:
        return 64 * 1024 * 1024  # conservative (v7x-sized) fallback


def _pick_batch_block(B, bytes_per_sample, budget):
    cap = max(1, min(B, budget // max(1, bytes_per_sample)))
    if cap >= B:
        bb = B
    else:
        bb = cap
        while bb > 1 and B % bb != 0:
            bb -= 1
    # v7x has 2 TensorCores: give the "parallel" batch axis >= 2 tiles whenever
    # the batch is large enough that splitting it is free.
    if B // bb < 2 and B >= 128 and B % 2 == 0:
        bb = B // 2
        while bb > 1 and B % bb != 0:
            bb -= 1
    return bb


def _gate_update(params_ref, g, x1, x2, out_ref, *, compute_dtype, scale, inv_g, b_blk):
    """Per-gate body: soft-gate membership, in-gate proportion, logistic head."""
    @pl.when(pl.program_id(1) == 0)
    def _init():
        out_ref[...] = jnp.zeros_like(out_ref)

    hk = params_ref[6, g] * 0.5                        # k/2  (f32 scalar)
    a1 = (hk * params_ref[0, g]).astype(compute_dtype)  # k/2 * low1
    b1 = (hk * params_ref[1, g]).astype(compute_dtype)  # k/2 * upp1
    a2 = (hk * params_ref[2, g]).astype(compute_dtype)
    b2 = (hk * params_ref[3, g]).astype(compute_dtype)
    w = params_ref[4, g]
    bias = params_ref[5, g]
    hkc = hk.astype(compute_dtype)

    z1 = hkc * x1                                      # (B_blk, NC, 128)
    z2 = hkc * x2
    # sig(a)sig(b)sig(c)sig(d) == (1/16) * prod(1 + tanh(./2)): 4 EUP tanh,
    # no reciprocal, saturates cleanly (sentinel-padded cells -> exactly 0).
    m = ((1.0 + jnp.tanh(z1 - a1)) * (1.0 + jnp.tanh(b1 - z1))
         * (1.0 + jnp.tanh(z2 - a2)) * (1.0 + jnp.tanh(b2 - z2)))

    # Cell reduction in f32: sublane-structured NC axis first, then lanes.
    s = jnp.sum(jnp.sum(m.astype(jnp.float32), axis=1), axis=-1)   # (B_blk,)
    feat = s * scale                                   # mean membership (1/16 folded in)
    pred = jax.nn.sigmoid(w * feat + bias)             # logistic-regression head, f32
    out_ref[...] = out_ref[...] + pred.reshape(1, 1, b_blk)   # lane-dense accumulate

    @pl.when(pl.program_id(1) == pl.num_programs(1) - 1)
    def _finalize():
        out_ref[...] = out_ref[...] * inv_g


def _slab_kernel(dims_ref, params_ref, x_ref, out_ref, *,
                 compute_dtype, scale, inv_g, b_blk):
    g = pl.program_id(1)
    x1 = x_ref[dims_ref[0, g]].astype(compute_dtype)   # (B_blk, NC, 128)
    x2 = x_ref[dims_ref[1, g]].astype(compute_dtype)
    _gate_update(params_ref, g, x1, x2, out_ref,
                 compute_dtype=compute_dtype, scale=scale, inv_g=inv_g, b_blk=b_blk)


def _column_kernel(dims_ref, params_ref, x1_ref, x2_ref, out_ref, *,
                   compute_dtype, scale, inv_g, b_blk):
    del dims_ref  # only used in the index_maps
    g = pl.program_id(1)
    x1 = x1_ref[...].astype(compute_dtype)
    x2 = x2_ref[...].astype(compute_dtype)
    _gate_update(params_ref, g, x1, x2, out_ref,
                 compute_dtype=compute_dtype, scale=scale, inv_g=inv_g, b_blk=b_blk)


def all_gates_forward(x, gate_dims, gate_params, *, compute_dtype=None,
                      force_column_path=False):
    """x: (B, N, M) float; gate_dims: (G, 2) int;
    gate_params: (G, 7) f32 = [low1, upp1, low2, upp2, w, b, sharpness]."""
    B, N, M = x.shape
    G = gate_dims.shape[0]
    if compute_dtype is None:
        compute_dtype = _compute_dtype()

    NC = -(-N // 128)                  # cell rows per sample (128 cells / lane row)
    n_pad = NC * 128
    inv_g = 1.0 / float(G)
    scale = 1.0 / (16.0 * float(N))    # 1/16 from the tanh form folded into the mean

    store_dtype = jnp.bfloat16         # always store bf16 (halves HBM traffic)
    st_isz = 2
    cd_isz = jnp.dtype(compute_dtype).itemsize

    # Single transpose/cast of the input; padded cells get a huge sentinel so
    # the soft-gate membership saturates to exactly 0 there (no in-kernel mask).
    xt = jnp.transpose(x, (2, 0, 1)).astype(store_dtype)           # (M, B, N)
    if n_pad != N:
        xt = jnp.pad(xt, ((0, 0), (0, 0), (0, n_pad - N)),
                     constant_values=_PAD_SENTINEL)
    xt = xt.reshape(M, B, NC, 128)

    # Scalar-prefetch operands, transposed so SMEM padding stays small at big G.
    # Sorting gates by (d0, d1) is free (sum over gates is order-independent)
    # and lets the column-gather fallback skip re-DMAs of repeated columns.
    order = jnp.lexsort((gate_dims[:, 1], gate_dims[:, 0]))
    dims_t = gate_dims.astype(jnp.int32)[order].T                  # (2, G)
    params_t = gate_params.astype(jnp.float32)[order].T            # (7, G)

    # Generation-aware VMEM budgeting (v7x: 64 MiB physical, v5e/v6e: 128 MiB).
    vmem_cap = _vmem_capacity_bytes()
    vmem_limit = min(int(vmem_cap * 3 // 4), 112 * 1024 * 1024)
    usable = vmem_limit // 2           # headroom for output/compiler scratch

    # Per-sample bytes: double-buffered input block(s) + per-gate intermediates.
    interm = 8 * n_pad * cd_isz
    slab_per_sample = 2 * M * n_pad * st_isz + interm
    col_per_sample = 2 * 2 * n_pad * st_isz + interm

    use_slab = (not force_column_path) and (slab_per_sample <= usable)
    per_sample = slab_per_sample if use_slab else col_per_sample
    # TODO(synk): if even a single sample exceeds the budget (enormous N), tile
    # the cell axis as an extra grid dimension instead of relying on B_blk == 1.
    B_blk = _pick_batch_block(B, per_sample, usable)
    num_b = B // B_blk

    kernel = functools.partial(
        _slab_kernel if use_slab else _column_kernel,
        compute_dtype=compute_dtype, scale=scale, inv_g=inv_g, b_blk=B_blk)

    if use_slab:
        # Whole marker slab per batch tile; block index constant across gates
        # => DMA'd once per batch tile, reused by every gate.
        in_specs = [pl.BlockSpec((M, B_blk, NC, 128),
                                 lambda bi, gi, d, p: (0, bi, 0, 0))]
        operands = (dims_t, params_t, xt)
    else:
        # Per-gate column gather via scalar-prefetched gate_dims (P2).
        in_specs = [
            pl.BlockSpec((None, B_blk, NC, 128),
                         lambda bi, gi, d, p: (d[0, gi], bi, 0, 0)),
            pl.BlockSpec((None, B_blk, NC, 128),
                         lambda bi, gi, d, p: (d[1, gi], bi, 0, 0)),
        ]
        operands = (dims_t, params_t, xt, xt)

    out = pl.pallas_call(
        kernel,
        out_shape=jax.ShapeDtypeStruct((num_b, 1, B_blk), jnp.float32),
        grid_spec=pltpu.PrefetchScalarGridSpec(
            num_scalar_prefetch=2,
            grid=(num_b, G),
            in_specs=in_specs,
            out_specs=pl.BlockSpec((1, 1, B_blk),
                                   lambda bi, gi, d, p: (bi, 0, 0)),
        ),
        compiler_params=pltpu.CompilerParams(
            dimension_semantics=("parallel", "arbitrary"),
            vmem_limit_bytes=vmem_limit),
    )(*operands)
    return out.reshape(B, 1)


def _reference(x, gate_dims, gate_params):
    """Pure-JAX f32 mirror of AllGatesModel.forward (sigmoid-product form)."""
    G = gate_dims.shape[0]
    x = x.astype(jnp.float32)
    pred = jnp.zeros((x.shape[0], 1), jnp.float32)
    for g in range(G):
        d1, d2 = int(gate_dims[g, 0]), int(gate_dims[g, 1])
        low1, upp1, low2, upp2, w, b, k = (float(gate_params[g, i]) for i in range(7))
        xd1, xd2 = x[:, :, d1], x[:, :, d2]
        m = (jax.nn.sigmoid(k * (xd1 - low1)) * jax.nn.sigmoid(k * (upp1 - xd1))
             * jax.nn.sigmoid(k * (xd2 - low2)) * jax.nn.sigmoid(k * (upp2 - xd2)))
        feat = jnp.mean(m, axis=-1, keepdims=True)
        pred = pred + jax.nn.sigmoid(w * feat + b)
    return pred / G


if __name__ == "__main__":
    key = jax.random.PRNGKey(0)
    B, N, M, G = 2, 256, 4, 3          # samples, cells per sample, markers, gates
    kx, kw, kb = jax.random.split(key, 3)

    x = jax.random.uniform(kx, (B, N, M), dtype=jnp.float32)

    # Which 2 marker dims each gate looks at.
    gate_dims = jnp.array([[0, 1], [1, 2], [2, 3]], dtype=jnp.int32)

    # Per-gate parameters: rectangular bounds, logistic-regression w/b, sharpness.
    bounds = jnp.array([[0.20, 0.80, 0.10, 0.70],
                        [0.30, 0.90, 0.20, 0.60],
                        [0.10, 0.50, 0.40, 0.95]], dtype=jnp.float32)
    lin_w = jax.random.normal(kw, (G, 1), dtype=jnp.float32)
    lin_b = jax.random.normal(kb, (G, 1), dtype=jnp.float32)
    sharp = jnp.full((G, 1), 10.0, dtype=jnp.float32)
    gate_params = jnp.concatenate([bounds, lin_w, lin_b, sharp], axis=1)  # (G, 7)

    ref = _reference(x, gate_dims, gate_params)
    tol = 5e-3  # bf16 storage (+ bf16 membership math on v6e/v7x)

    # Primary path: whole-marker-slab DMA per batch tile.
    out = jax.block_until_ready(all_gates_forward(x, gate_dims, gate_params))
    assert out.shape == (B, 1)
    assert jnp.allclose(out, ref, atol=tol, rtol=tol), (out, ref)

    # Also exercise the column-gather fallback (used when M*N is too large for
    # a whole-marker slab per batch tile).
    out_col = jax.block_until_ready(
        all_gates_forward(x, gate_dims, gate_params, force_column_path=True))
    assert jnp.allclose(out_col, ref, atol=tol, rtol=tol), (out_col, ref)

    print("KERNEL_OK")
</pallas_src>

<mosaic_0001>
module attributes {stable_mosaic.version = 11 : i64} {
  func.func @_slab_kernel(%arg0: i32, %arg1: i32, %arg2: memref<2x3xi32, #tpu.memory_space<smem>>, %arg3: memref<7x3xf32, #tpu.memory_space<smem>>, %arg4: memref<4x2x2x128xbf16, #tpu.memory_space<vmem>>, %arg5: memref<1x1x2xf32, #tpu.memory_space<vmem>>) attributes {dimension_semantics = [#tpu.dimension_semantics<parallel>, #tpu.dimension_semantics<arbitrary>], iteration_bounds = array<i64: 1, 3>, scalar_prefetch = 2 : i64, scratch_operands = 0 : i64, tpu.core_type = #tpu.core_type<tc>, window_params = [{transform_indices = @transform_0, window_bounds = array<i64: 4, 2, 2, 128>}, {transform_indices = @transform_1, window_bounds = array<i64: 1, 1, 2>}]} {
    %c0 = arith.constant 0 : index
    %0 = arith.index_cast %arg1 : i32 to index
    %1 = memref.load %arg2[%c0, %0] : memref<2x3xi32, #tpu.memory_space<smem>>
    %2 = arith.index_cast %1 : i32 to index
    %c0_0 = arith.constant 0 : index
    %c0_1 = arith.constant 0 : index
    %c0_2 = arith.constant 0 : index
    %3 = vector.load %arg4[%2, %c0_0, %c0_1, %c0_2] : memref<4x2x2x128xbf16, #tpu.memory_space<vmem>>, vector<1x2x2x128xbf16>
    %4 = vector.shape_cast %3 : vector<1x2x2x128xbf16> to vector<2x2x128xbf16>
    %5 = arith.extf %4 : vector<2x2x128xbf16> to vector<2x2x128xf32>
    %c1 = arith.constant 1 : index
    %6 = arith.index_cast %arg1 : i32 to index
    %7 = memref.load %arg2[%c1, %6] : memref<2x3xi32, #tpu.memory_space<smem>>
    %8 = arith.index_cast %7 : i32 to index
    %c0_3 = arith.constant 0 : index
    %c0_4 = arith.constant 0 : index
    %c0_5 = arith.constant 0 : index
    %9 = vector.load %arg4[%8, %c0_3, %c0_4, %c0_5] : memref<4x2x2x128xbf16, #tpu.memory_space<vmem>>, vector<1x2x2x128xbf16>
    %10 = vector.shape_cast %9 : vector<1x2x2x128xbf16> to vector<2x2x128xbf16>
    %11 = arith.extf %10 : vector<2x2x128xbf16> to vector<2x2x128xf32>
    %c0_i32 = arith.constant 0 : i32
    %12 = arith.cmpi eq, %arg1, %c0_i32 : i32
    %13 = arith.extui %12 : i1 to i32
    %c0_i32_6 = arith.constant 0 : i32
    %14 = arith.cmpi ne, %13, %c0_i32_6 : i32
    scf.if %14 {
      %cst_24 = arith.constant 0.000000e+00 : f32
      %81 = vector.broadcast %cst_24 : f32 to vector<1x1x2xf32>
      %c0_25 = arith.constant 0 : index
      %c0_26 = arith.constant 0 : index
      %c0_27 = arith.constant 0 : index
      %82 = vector.load %arg5[%c0_25, %c0_26, %c0_27] : memref<1x1x2xf32, #tpu.memory_space<vmem>>, vector<1x1x2xf32>
      tpu.vector_store %arg5[%c0_25, %c0_26, %c0_27], %81 {strides = array<i32>} : memref<1x1x2xf32, #tpu.memory_space<vmem>>, vector<1x1x2xf32>,
    } else {
    }
    %c6 = arith.constant 6 : index
    %15 = arith.index_cast %arg1 : i32 to index
    %16 = memref.load %arg3[%c6, %15] : memref<7x3xf32, #tpu.memory_space<smem>>
    %cst = arith.constant 5.000000e-01 : f32
    %17 = arith.mulf %16, %cst : f32
    %c0_7 = arith.constant 0 : index
    %18 = arith.index_cast %arg1 : i32 to index
    %19 = memref.load %arg3[%c0_7, %18] : memref<7x3xf32, #tpu.memory_space<smem>>
    %20 = arith.mulf %17, %19 : f32
    %c1_8 = arith.constant 1 : index
    %21 = arith.index_cast %arg1 : i32 to index
    %22 = memref.load %arg3[%c1_8, %21] : memref<7x3xf32, #tpu.memory_space<smem>>
    %23 = arith.mulf %17, %22 : f32
    %c2 = arith.constant 2 : index
    %24 = arith.index_cast %arg1 : i32 to index
    %25 = memref.load %arg3[%c2, %24] : memref<7x3xf32, #tpu.memory_space<smem>>
    %26 = arith.mulf %17, %25 : f32
    %c3 = arith.constant 3 : index
    %27 = arith.index_cast %arg1 : i32 to index
    %28 = memref.load %arg3[%c3, %27] : memref<7x3xf32, #tpu.memory_space<smem>>
    %29 = arith.mulf %17, %28 : f32
    %c4 = arith.constant 4 : index
    %30 = arith.index_cast %arg1 : i32 to index
    %31 = memref.load %arg3[%c4, %30] : memref<7x3xf32, #tpu.memory_space<smem>>
    %c5 = arith.constant 5 : index
    %32 = arith.index_cast %arg1 : i32 to index
    %33 = memref.load %arg3[%c5, %32] : memref<7x3xf32, #tpu.memory_space<smem>>
    %34 = vector.broadcast %17 : f32 to vector<2x2x128xf32>
    %35 = arith.mulf %34, %5 : vector<2x2x128xf32>
    %36 = vector.broadcast %17 : f32 to vector<2x2x128xf32>
    %37 = arith.mulf %36, %11 : vector<2x2x128xf32>
    %38 = vector.broadcast %20 : f32 to vector<2x2x128xf32>
    %39 = arith.subf %35, %38 : vector<2x2x128xf32>
    %40 = math.tanh %39 : vector<2x2x128xf32>
    %cst_9 = arith.constant 1.000000e+00 : f32
    %41 = vector.broadcast %cst_9 : f32 to vector<2x2x128xf32>
    %42 = arith.addf %41, %40 : vector<2x2x128xf32>
    %43 = vector.broadcast %23 : f32 to vector<2x2x128xf32>
    %44 = arith.subf %43, %35 : vector<2x2x128xf32>
    %45 = math.tanh %44 : vector<2x2x128xf32>
    %cst_10 = arith.constant 1.000000e+00 : f32
    %46 = vector.broadcast %cst_10 : f32 to vector<2x2x128xf32>
    %47 = arith.addf %46, %45 : vector<2x2x128xf32>
    %48 = arith.mulf %42, %47 : vector<2x2x128xf32>
    %49 = vector.broadcast %26 : f32 to vector<2x2x128xf32>
    %50 = arith.subf %37, %49 : vector<2x2x128xf32>
    %51 = math.tanh %50 : vector<2x2x128xf32>
    %cst_11 = arith.constant 1.000000e+00 : f32
    %52 = vector.broadcast %cst_11 : f32 to vector<2x2x128xf32>
    %53 = arith.addf %52, %51 : vector<2x2x128xf32>
    %54 = arith.mulf %48, %53 : vector<2x2x128xf32>
    %55 = vector.broadcast %29 : f32 to vector<2x2x128xf32>
    %56 = arith.subf %55, %37 : vector<2x2x128xf32>
    %57 = math.tanh %56 : vector<2x2x128xf32>
    %cst_12 = arith.constant 1.000000e+00 : f32
    %58 = vector.broadcast %cst_12 : f32 to vector<2x2x128xf32>
    %59 = arith.addf %58, %57 : vector<2x2x128xf32>
    %60 = arith.mulf %54, %59 : vector<2x2x128xf32>
    %cst_13 = arith.constant dense<0.000000e+00> : vector<2x128xf32>
    %61 = vector.multi_reduction <add>, %60, %cst_13 [1] : vector<2x2x128xf32> to vector<2x128xf32>
    %cst_14 = arith.constant dense<0.000000e+00> : vector<2xf32>
    %62 = vector.multi_reduction <add>, %61, %cst_14 [1] : vector<2x128xf32> to vector<2xf32>
    %cst_15 = arith.constant 2.44140625E-4 : f32
    %63 = vector.broadcast %cst_15 : f32 to vector<2xf32>
    %64 = arith.mulf %62, %63 : vector<2xf32>
    %65 = vector.broadcast %31 : f32 to vector<2xf32>
    %66 = arith.mulf %65, %64 : vector<2xf32>
    %67 = vector.broadcast %33 : f32 to vector<2xf32>
    %68 = arith.addf %66, %67 : vector<2xf32>
    %69 = arith.negf %68 : vector<2xf32>
    %70 = math.exp %69 : vector<2xf32>
    %cst_16 = arith.constant 1.000000e+00 : f32
    %71 = vector.broadcast %cst_16 : f32 to vector<2xf32>
    %72 = arith.addf %71, %70 : vector<2xf32>
    %73 = arith.divf %71, %72 : vector<2xf32>
    %c0_17 = arith.constant 0 : index
    %c0_18 = arith.constant 0 : index
    %c0_19 = arith.constant 0 : index
    %74 = vector.load %arg5[%c0_17, %c0_18, %c0_19] : memref<1x1x2xf32, #tpu.memory_space<vmem>>, vector<1x1x2xf32>
    %75 = vector.shape_cast %73 : vector<2xf32> to vector<1x1x2xf32>
    %76 = arith.addf %74, %75 : vector<1x1x2xf32>
    %c0_20 = arith.constant 0 : index
    %c0_21 = arith.constant 0 : index
    %c0_22 = arith.constant 0 : index
    %77 = vector.load %arg5[%c0_20, %c0_21, %c0_22] : memref<1x1x2xf32, #tpu.memory_space<vmem>>, vector<1x1x2xf32>
    tpu.vector_store %arg5[%c0_20, %c0_21, %c0_22], %76 {strides = array<i32>} : memref<1x1x2xf32, #tpu.memory_space<vmem>>, vector<1x1x2xf32>,
    %c2_i32 = arith.constant 2 : i32
    %78 = arith.cmpi eq, %arg1, %c2_i32 : i32
    %79 = arith.extui %78 : i1 to i32
    %c0_i32_23 = arith.constant 0 : i32
    %80 = arith.cmpi ne, %79, %c0_i32_23 : i32
    scf.if %80 {
      %c0_24 = arith.constant 0 : index
      %c0_25 = arith.constant 0 : index
      %c0_26 = arith.constant 0 : index
      %81 = vector.load %arg5[%c0_24, %c0_25, %c0_26] : memref<1x1x2xf32, #tpu.memory_space<vmem>>, vector<1x1x2xf32>
      %cst_27 = arith.constant 0.333333343 : f32
      %82 = vector.broadcast %cst_27 : f32 to vector<1x1x2xf32>
      %83 = arith.mulf %81, %82 : vector<1x1x2xf32>
      %c0_28 = arith.constant 0 : index
      %c0_29 = arith.constant 0 : index
      %c0_30 = arith.constant 0 : index
      %84 = vector.load %arg5[%c0_28, %c0_29, %c0_30] : memref<1x1x2xf32, #tpu.memory_space<vmem>>, vector<1x1x2xf32>
      tpu.vector_store %arg5[%c0_28, %c0_29, %c0_30], %83 {strides = array<i32>} : memref<1x1x2xf32, #tpu.memory_space<vmem>>, vector<1x1x2xf32>,
    } else {
    }
    return
  }
  func.func @transform_0(%arg0: i32, %arg1: i32, %arg2: memref<2x3xi32, #tpu.memory_space<smem>>, %arg3: memref<7x3xf32, #tpu.memory_space<smem>>) -> (i32, i32, i32, i32) {
    %c0_i32 = arith.constant 0 : i32
    %c0_i32_0 = arith.constant 0 : i32
    %c0_i32_1 = arith.constant 0 : i32
    %c0_i32_2 = arith.constant 0 : i32
    return %c0_i32, %arg0, %c0_i32_0, %c0_i32_1 : i32, i32, i32, i32
  }
  func.func @transform_1(%arg0: i32, %arg1: i32, %arg2: memref<2x3xi32, #tpu.memory_space<smem>>, %arg3: memref<7x3xf32, #tpu.memory_space<smem>>) -> (i32, i32, i32) {
    %c0_i32 = arith.constant 0 : i32
    %c0_i32_0 = arith.constant 0 : i32
    %c0_i32_1 = arith.constant 0 : i32
    return %arg0, %c0_i32, %c0_i32_0 : i32, i32, i32
  }
}

</mosaic_0001>

<bundles_post_ra>
// kernel: tpu_custom_call.1
= control target key start
LH: loop header
LB: loop body
LE: loop exit
PB: predicated region body
PF: predicated region fallthrough
CT: control target
= control target key end

     0   :  { %s531_s18 = smov [#allocation3]   ;;  %s532_s19 = smov [#allocation4]   ;;  %s628_s0 = inlined_call_operand.vmem [shape: s32[2,3], index: 0, kind: input, shape index: {}]   ;;  %s629_s2 = inlined_call_operand.vmem [shape: bf16[4,2,2,128], index: 2, kind: input, shape index: {}]   ;;  %s630_s3 = inlined_call_operand.hbm [shape: f32[1,1,2], index: 3, kind: output, shape index: {}]   ;;  %s631_s1 = inlined_call_operand.vmem [shape: f32[7,3], index: 1, kind: input, shape index: {}]  }
   0x1   :  { %s9_s14 = sshll.u32 %s628_s0, 4  ;;  %s14_s17 = sshll.u32 %s631_s1, 4  ;;  %s10_s14 = int_to_ptr.vmem [resolvable:$true] %s9_s14  ;;  %s15_s17 = int_to_ptr.vmem [resolvable:$true] %s14_s17 }
   0x2   :  { %12 = dma.vmem_to_smem %s10_s14, 32, %s531_s18, [#allocation2] }
   0x3   :  { %17 = dma.vmem_to_smem %s15_s17, 128, %s532_s19, [#allocation2] }
   0x4   :  { %513 = dma.done.wait [#allocation2], 160 }
   0x5   :  { %514 = vsyncadd [#allocation2], 4294967136 }
   0x6   :  { %20 = sfence }
   0x7   :  { %21 = vsyncpa [#allocation6], 0  ;;  %s562_s20 = smov 0   ;;  %s564_s21 = smov 0  }
   0x8   :  { %s566_s22 = smov 0  }
   0x9 LB: > { %s362_s0 = sadd.s32 4294967295, %s529_s22   ;;  %s36_s1 = sadd.s32 1, %s525_s21  ;;  %s529_s22 = sphi %s566_s22, %s27_s22   ;;  %s525_s21 = sphi %s564_s21, %s633_s21   ;;  %s521_s20 = sphi %s562_s20, %s632_s20  }
   0xa   : > { %p37_p0 = scmp.ge.s32.totalorder %s36_s1, 3  ;;  %p365_p1 = scmp.ge.s32.totalorder %s529_s22, 1 }
   0xb   : > { %p115_p2 = scmp.lt.s32.totalorder %s529_s22, 4 }
   0xc   : > { %s635_s1 = smov (%p37_p0, %s36_s1), 0 }
   0xd   : > { %p116_p3 = pnand %p365_p1, %p115_p2 }
   0xe   : > { %s134_s23 = sld [smem:[#allocation3 + %s521_s20]] (!%p116_p3)  ;;  %s141_s24 = sshra.s32 (!%p116_p3), %s521_s20, 7 }
   0xf   : > { %119 = sbr.rel (%p116_p3) target bundleno = 375 (0x177), region = 24  ;;  %s585_s25 = sshll.u32 (!%p116_p3), %s141_s24, 7 }
  0x10   : > { %s588_s26 = sand.u32 (!%p116_p3), 127, %s521_s20  ;;  %s382_s27 = sadd.s32 (!%p116_p3), 128, %s585_s25 }
  0x11   : > { %s147_s28 = sadd.s32 (!%p116_p3), %s382_s27, %s588_s26  ;;  %p369_p4 = scmp.ne.s32.totalorder (!%p116_p3), %s521_s20, 0 }
  0x12   : > { %s148_s29 = sld [smem:[#allocation3 + %s147_s28]] (!%p116_p3) }
  0x14   : > { %s366_s30 = sshll.u32 %s134_s23, 1 }
  0x15   : > { %s136_s6 = scalar_lea.vmem %s629_s2, %s366_s30 }
  0x16   : > { %v137_v0 = vld [vmem:[%s136_s6] sm:$0x1]  ;;  %v138_v1 = vld [vmem:[%s136_s6 + $0x1] sm:$0x1] }
  0x17   : > { %v139_v2 = vunpack.c.l.bf16 %v137_v0  ;;  %v140_v3 = vunpack.c.l.bf16 %v138_v1  ;;  %158 = sbr.rel (%p369_p4) target bundleno = 30 (0x1e), region = 28 }
  0x18   : > { %s368_s7 = sshll.u32 %s148_s29, 1 }
  0x19   : > { %s150_s10 = scalar_lea.vmem %s629_s2, %s368_s7 }
  0x1a   : > { %v151_v4 = vld [vmem:[%s150_s10] sm:$0x1]  ;;  %v152_v5 = vld [vmem:[%s150_s10 + $0x1] sm:$0x1] }
  0x1b   : > { %v153_v6 = vunpack.c.l.bf16 %v151_v4  ;;  %v154_v7 = vunpack.c.l.bf16 %v152_v5 }
  0x1c   : > { %vm159_vm0 = vcmask 8192   ;;  %v533_v8 = vmov 0.0  }
  0x1d   : > { %160 = vst.msk [vmem:[#allocation5] sm:$0x1] %vm159_vm0, %v533_v8 }
  0x1e PF: > { %s384_s11 = sadd.s32 768, %s585_s25  ;;  %s166_s12 = sld [smem:[#allocation4 + %s521_s20]]  ;;  %vm227_vm1 = vcmask 1041408   ;;  %vm244_vm2 = vcmask 1041409   ;;  %vm290_vm7 = vcmask 8192  }
  0x1f   : > { %s163_s13 = sadd.s32 %s384_s11, %s588_s26  ;;  %s168_s14 = sld [smem:[#allocation4 + %s147_s28]] }
  0x20   : > { %s164_s15 = sld [smem:[#allocation4 + %s163_s13]]  ;;  %s386_s16 = sadd.s32 256, %s585_s25 }
  0x21   : > { %s172_s17 = sadd.s32 %s386_s16, %s588_s26  ;;  %s388_s18 = sadd.s32 384, %s585_s25 }
  0x22   : > { %s173_s19 = sld [smem:[#allocation4 + %s172_s17]]  ;;  %s177_s23 = sadd.s32 %s388_s18, %s588_s26 }
  0x23   : > { %s178_s24 = sld [smem:[#allocation4 + %s177_s23]]  ;;  %s390_s28 = sadd.s32 512, %s585_s25 }
  0x24   : > { %s392_s6 = sadd.s32 640, %s585_s25  ;;  %s182_s7 = sadd.s32 %s390_s28, %s588_s26 }
  0x25   : > { %s186_s8 = sadd.s32 %s392_s6, %s588_s26  ;;  %s183_s9 = sld [smem:[#allocation4 + %s182_s7]] }
  0x26   : > { %s165_s27 = smul.f32 0.5, %s164_s15  ;;  %s187_s10 = sld [smem:[#allocation4 + %s186_s8]] }
  0x27   : > { %p376_p5 = scmp.ne.s32.totalorder %s521_s20, 2 }
  0x28   : > { %s167_s29 = smul.f32 %s166_s12, %s165_s27  ;;  %v188_v9 = vstv %s165_s27 }
  0x29   : > { %s169_s30 = smul.f32 %s168_s14, %s165_s27  ;;  %v189_v10 = vmul.f32 %v188_v9, %v139_v2  ;;  %v190_v11 = vmul.f32 %v188_v9, %v140_v3  ;;  %v191_v12 = vmul.f32 %v188_v9, %v153_v6  ;;  %v192_v13 = vmul.f32 %v188_v9, %v154_v7 }
  0x2a   : > { %s174_s4 = smul.f32 %s173_s19, %s165_s27  ;;  %v193_v14 = vstv %s167_s29  ;;  %v534_v7 = vmov 0  }
  0x2b   : > { %s179_s5 = smul.f32 %s178_s24, %s165_s27  ;;  %v194_v15 = vsub.f32 %v189_v10, %v193_v14  ;;  %v195_v16 = vsub.f32 %v190_v11, %v193_v14  ;;  %v200_v17 = vstv %s169_s30  ;;  %v251_v0 = vstv %s183_s9  ;;  %428 = vset.pattern.permute.xlu0 %v534_v7 }
  0x2c   : > { %v201_v18 = vsub.f32 %v200_v17, %v189_v10  ;;  %v202_v19 = vsub.f32 %v200_v17, %v190_v11  ;;  %v209_v20 = vstv %s174_s4  ;;  %v253_v3 = vstv %s187_s10 }
  0x2d   : > { %429 = vtanh.f32 %v194_v15  ;;  %v210_v21 = vsub.f32 %v191_v12, %v209_v20  ;;  %v218_v22 = vstv %s179_s5  ;;  %v211_v23 = vsub.f32 %v192_v13, %v209_v20 }
  0x2e   : > { %431 = vtanh.f32 %v195_v16  ;;  %v219_v24 = vsub.f32 %v218_v22, %v191_v12  ;;  %v220_v25 = vsub.f32 %v218_v22, %v192_v13 }
  0x2f   : > { %433 = vtanh.f32 %v201_v18 }
  0x30   : > { %435 = vtanh.f32 %v202_v19 }
  0x31   : > { %437 = vtanh.f32 %v210_v21 }
  0x32   : > { %439 = vtanh.f32 %v211_v23  ;;  %v285_v23 = vlaneseq }
  0x33   : > { %v430_v26 = vpop.eup %429  ;;  %441 = vtanh.f32 %v219_v24 }
  0x34   : > { %v432_v27 = vpop.eup %431  ;;  %v198_v28 = vadd.f32 1.0, %v430_v26  ;;  %443 = vtanh.f32 %v220_v25  ;;  %v286_v24 = vand.u32 127, %v285_v23  ;;  %v274_v25 = vld [vmem:[#allocation5] sm:$0x1] }
  0x35   : > { %v434_v29 = vpop.eup %433  ;;  %v199_v30 = vadd.f32 1.0, %v432_v27 }
  0x36   : > { %v436_v31 = vpop.eup %435  ;;  %v205_v32 = vadd.f32 1.0, %v434_v29 }
  0x37   : > { %v438_v33 = vpop.eup %437  ;;  %v206_v34 = vadd.f32 1.0, %v436_v31 }
  0x38   : > { %v440_v35 = vpop.eup %439  ;;  %v207_v36 = vmul.f32 %v205_v32, %v198_v28  ;;  %v214_v37 = vadd.f32 1.0, %v438_v33 }
  0x39   : > { %v442_v38 = vpop.eup %441  ;;  %v208_v39 = vmul.f32 %v206_v34, %v199_v30  ;;  %v215_v40 = vadd.f32 1.0, %v440_v35 }
  0x3a   : > { %v444_v41 = vpop.eup %443  ;;  %v216_v42 = vmul.f32 %v214_v37, %v207_v36  ;;  %v223_v43 = vadd.f32 1.0, %v442_v38 }
  0x3b   : > { %v217_v44 = vmul.f32 %v215_v40, %v208_v39  ;;  %v224_v45 = vadd.f32 1.0, %v444_v41 }
  0x3c   : > { %v225_v46 = vmul.f32 %v223_v43, %v216_v42 }
  0x3d   : > { %v226_v47 = vmul.f32 %v224_v45, %v217_v44 }
  0x3e   : > { %v228_v48 = vsel %vm227_vm1, %v225_v46, 0.0 }
  0x3f   : > { %v229_v49 = vrot.slane %v228_v48, 4  ;;  %v235_v50 = vsel %vm227_vm1, %v226_v47, 0.0 }
  0x40   : > { %v236_v51 = vrot.slane %v235_v50, 4 }
  0x41   : > { %v230_v52 = vadd.f32 %v229_v49, %v228_v48 }
  0x42   : > { %v237_v53 = vadd.f32 %v236_v51, %v235_v50 }
  0x43   : > { %v231_v54 = vrot.slane %v230_v52, 2 }
  0x44   : > { %v238_v55 = vrot.slane %v237_v53, 2 }
  0x45   : > { %v232_v56 = vadd.f32 %v231_v54, %v230_v52 }
  0x46   : > { %v239_v57 = vadd.f32 %v238_v55, %v237_v53 }
  0x47   : > { %v233_v58 = vrot.slane %v232_v56, 1 }
  0x48   : > { %v240_v59 = vrot.slane %v239_v57, 1 }
  0x49   : > { %v234_v60 = vadd.f32 %v233_v58, %v232_v56 }
  0x4a   : > { %v241_v61 = vadd.f32 %v240_v59, %v239_v57 }
  0x4c   : > { %v245_v62 = vsel %vm244_vm2, %v241_v61, %v234_v60 }
  0x4d   : > { %v247_v63 = vsel %vm227_vm1, %v245_v62, 0.0 }
  0x4e   : > { %248 = vadd.xlane.f32.xlu0 %v247_v63 }
  0xc1   : > { %v249_v1 = vpop.xlane.xlu0 %248 }
  0xc2   : > { %v250_v2 = vmul.f32 0.00024414063, %v249_v1 }
  0xc4   : > { %v252_v4 = vmul.f32 %v251_v0, %v250_v2 }
  0xc6   : > { %v254_v5 = vadd.f32 %v253_v3, %v252_v4 }
  0xc8   : > { %v375_v6 = vmul.f32 -1.442695, %v254_v5 }
  0xca   : > { %445 = vpow2.f32 %v375_v6 }
  0xd0   : > { %v446_v8 = vpop.eup %445 }
  0xd1   : > { %v258_v9 = vadd.f32 1.0, %v446_v8 }
  0xd3   : > { %447 = vrcp.f32 %v258_v9  ;;  %v270_v13 = vand.u32 2147483648, %v258_v9  ;;  %v268_v15 = vand.u32 2147483647, %v258_v9  ;;  %vm264_vm4 = vweird.f32 %v258_v9 }
  0xd5   : > { %v271_v17 = vor.u32 1.1754944e-38, %v270_v13  ;;  %vm269_vm6 = vcmp.eq.f32.partialorder %v268_v15, 8.507059e+37 }
  0xd9   : > { %v448_v10 = vpop.eup %447 }
  0xda   : > { %v260_v11 = vmul.f32 %v448_v10, %v258_v9  ;;  %vm265_vm3 = vweird.f32 %v448_v10 }
  0xdb   : > { %vm266_vm5 = vmor %vm264_vm4, %vm265_vm3 }
  0xdc   : > { %v261_v12 = vsub.f32 1.0, %v260_v11 }
  0xde   : > { %v262_v14 = vmul.f32 %v448_v10, %v261_v12 }
  0xe0   : > { %v263_v16 = vadd.f32 %v448_v10, %v262_v14 }
  0xe2   : > { %v267_v18 = vsel %vm266_vm5, %v448_v10, %v263_v16 }
  0xe3   : > { %v272_v19 = vsel %vm269_vm6, %v271_v17, %v267_v18 }
  0xe4   : > { %v276_v20 = vperm.slane %v272_v19, 0  ;;  %v277_v21 = vperm.slane %v272_v19, 1 }
  0xe6   : > { %278 = vst [vmem:[#allocation1] ss:$9 sm:$0xff] %v276_v20 }
  0xe7   : > { %280 = vst [vmem:[#allocation1 + $0x1] ss:$9 sm:$0xff] %v277_v21 }
  0xee   : > { %v281_v22 = vld [vmem:[#allocation1] sm:$0xff] }
  0xef   : > { %283 = vperm.xlu0 %428, %v281_v22  }
 0x161   : > { %v284_v26 = vpop.permute.xlu0 %283 }
 0x162   : > { %v287_v27 = vperm.slane %v284_v26, %v286_v24  ;;  %295 = sbr.rel (%p376_p5) target bundleno = 369 (0x171), region = 32 }
 0x164   : > { %v289_v28 = vadd.f32 %v287_v27, %v274_v25 }
 0x166   : > { %291 = vst.msk [vmem:[#allocation5] sm:$0x1] %vm290_vm7, %v289_v28 }
 0x16d   : > { %v296_v29 = vld [vmem:[#allocation5] sm:$0x1] }
 0x16e   : > { %v297_v30 = vmul.f32 0.33333334, %v296_v29 }
 0x170   : > { %298 = vst.msk [vmem:[#allocation5] sm:$0x1] %vm290_vm7, %v297_v30 }
 0x171 PF: > { %p397_p6 = scmp.eq.s32.totalorder %s362_s0, 2  ;;  %s308_s11 = sshll.u32 %s630_s3, 4  ;;  %s309_s11 = int_to_ptr.hbm [resolvable:$true] %s308_s11 }
 0x172   : > { %s535_s12 = smov [#allocation5]  }
 0x173   : > { %s306_s13 = sshll.u32 %s535_s12, 4  ;;  %s307_s13 = int_to_ptr.vmem [resolvable:$true] %s306_s13 }
 0x174   : > { %394 = dma.vmem_to_hbm [thread:$0]  (%p397_p6), %s307_s13, 16, %s309_s11, [#allocation6]  }
 0x175   : > { %516 = dma.done.wait (%p397_p6), [#allocation6], 16  }
 0x176   : > { %518 = vsyncadd (%p397_p6), [#allocation6], 4294967280 }
 0x177 PF: > { %s27_s22 = sadd.s32 1, %s529_s22   ;;  %s632_s20 = smov %s525_s21 }
 0x178   : > { %p24_p7 = scmp.ge.s32.totalorder %s27_s22, 5   ;;  %s633_s21 = smov %s635_s1 }
 0x17a   :  { %26 = sbr.rel (!%p24_p7) target bundleno = 9 (0x9), region = 63 }
 0x17f   :  { %322 = vsyncpa [#allocation6], 1 }
 0x180   :  { %324 = vsyncpa [#allocation6 + $0x1], 1 }

</bundles_post_ra>
